<compile_context>
chip_gen: v7x
topology: tpu7x:2x2x1
jax: 0.10.0
libtpu: 0.0.40
codegen_flags: <defaults>
</compile_context>

<pallas_src>
import jax
import jax.numpy as jnp
from jax import lax
from jax.experimental import pallas as pl
from jax.experimental.pallas import tpu as pltpu


# ----------------------------------------------------------------------------
# One-time weight lowering (runs once, outside the hot path)
# ----------------------------------------------------------------------------
def _conv_out(n, k, s, p):
    return (n + 2 * p - k) // s + 1


def _round_up(n, m):
    return ((n + m - 1) // m) * m


def conv_as_gemm_weight(w, H, W, stride, padding, row_order="nhwc"):
    """Lower a PyTorch Conv2d weight (Cout, Cin, kH, kW) to a dense GEMM matrix.

    Columns are always NHWC-flattened outputs: col = (oy*Wo + ox)*Cout + o.
    Rows follow `row_order`:
      "nhwc": row = (iy*W + ix)*Cin + c   (matches an NHWC-flat activation)
      "nchw": row = (c*H + iy)*W + ix     (matches raw NCHW x.reshape — free view)
    """
    Cout, Cin, kH, kW = w.shape
    Ho, Wo = _conv_out(H, kH, stride, padding), _conv_out(W, kW, stride, padding)
    iy, ix = jnp.arange(H), jnp.arange(W)
    oy, ox = jnp.arange(Ho), jnp.arange(Wo)
    ky = iy[:, None] + padding - stride * oy[None, :]          # (H, Ho)
    kx = ix[:, None] + padding - stride * ox[None, :]          # (W, Wo)
    vy = (ky >= 0) & (ky < kH)
    vx = (kx >= 0) & (kx < kW)
    kyc = jnp.clip(ky, 0, kH - 1)
    kxc = jnp.clip(kx, 0, kW - 1)
    # t[o, c, iy, oy, ix, ox] = w[o, c, ky, kx]  (masked where the kernel tap is OOB)
    t = w[:, :, kyc, :]                                        # (Cout, Cin, H, Ho, kW)
    t = t[:, :, :, :, kxc]                                     # (Cout, Cin, H, Ho, W, Wo)
    mask = vy[None, None, :, :, None, None] & vx[None, None, None, None, :, :]
    t = jnp.where(mask, t, 0.0)
    if row_order == "nchw":
        t = t.transpose(1, 2, 4, 3, 5, 0)                      # (Cin, H, W, Ho, Wo, Cout)
    else:
        t = t.transpose(2, 4, 1, 3, 5, 0)                      # (H, W, Cin, Ho, Wo, Cout)
    return t.reshape(H * W * Cin, Ho * Wo * Cout)


def prepare_params(params, H, W, dtype=jnp.float32):
    """Lower conv1 to a GEMM matrix (NCHW rows) and fold the fully-affine tail
    (conv2 -> fc1 -> [fc_mu | fc_logvar]) into precomputed matrices.  Folding is
    done in f32; the GEMM operands are cast to `dtype` (e.g. bf16) at the end."""
    w1, b1 = params["conv1_w"], params["conv1_b"]
    w2, b2 = params["conv2_w"], params["conv2_b"]
    k = w1.shape[2]
    Ho1, Wo1 = _conv_out(H, k, 2, 1), _conv_out(W, k, 2, 1)
    Ho2, Wo2 = _conv_out(Ho1, k, 2, 1), _conv_out(Wo1, k, 2, 1)
    # fc1.in_features == hidden_dim forces a 1x1 conv2 output, so the NHWC flatten
    # used here coincides with PyTorch's NCHW flatten.
    assert Ho2 == 1 and Wo2 == 1, (Ho2, Wo2)

    emb = params["fc1_w"].shape[0]

    # conv1: rows in NCHW order so x.reshape(B, Cin*H*W) feeds it with no transpose.
    w1g = conv_as_gemm_weight(w1, H, W, 2, 1, row_order="nchw")    # (Cin*H*W, Ho1*Wo1*hid)
    b1g = jnp.tile(b1, Ho1 * Wo1).reshape(1, -1)                   # (1, Ho1*Wo1*hid)

    # Affine tail, all folded in f32:
    #   out = relu1 @ (w2g @ wf @ wh_x) + y @ wh_y + ((b2g @ wf + bf) @ wh_x + bh)
    w2g = conv_as_gemm_weight(w2, Ho1, Wo1, 2, 1, row_order="nhwc")  # (Ho1*Wo1*hid, hid)
    b2g = jnp.tile(b2, Ho2 * Wo2).reshape(1, -1)                     # (1, hid)
    wf = params["fc1_w"].T                                           # (hid, emb)
    bf = params["fc1_b"].reshape(1, -1)
    wmu, wlv = params["fc_mu_w"], params["fc_lv_w"]                  # (lat, 2*emb)
    wh_x = jnp.concatenate([wmu[:, :emb].T, wlv[:, :emb].T], axis=1)  # (emb, 2*lat)
    wh_y = jnp.concatenate([wmu[:, emb:].T, wlv[:, emb:].T], axis=1)  # (emb, 2*lat)
    bh = jnp.concatenate([params["fc_mu_b"], params["fc_lv_b"]]).reshape(1, -1)

    wx_head = w2g @ (wf @ wh_x)                                      # (Ho1*Wo1*hid, 2*lat)
    b_fold = (b2g @ wf + bf) @ wh_x + bh                             # (1, 2*lat)

    return {
        "w1": w1g.astype(dtype),           # conv1 GEMM matrix
        "b1": b1g.astype(jnp.float32),     # biases stay f32 (added to f32 MXU output)
        "wx": wx_head.astype(dtype),       # folded conv2 -> fc1 -> heads (x path)
        "wy": wh_y.astype(dtype),          # folded heads (y path of the concat)
        "b": b_fold.astype(jnp.float32),   # folded bias for [mu | logvar]
    }


# ----------------------------------------------------------------------------
# Fused Pallas kernel: whole encoder forward for one batch tile (3 GEMMs)
# ----------------------------------------------------------------------------
def _encoder_fused_kernel(x_ref, y_ref, w1_ref, b1_ref, wx_ref, wy_ref, b_ref, out_ref):
    f32 = jnp.float32
    # conv1 as one GEMM (NHWC output, channels on lanes) + bias + ReLU (f32 acc).
    h = jnp.dot(x_ref[...], w1_ref[...], preferred_element_type=f32) + b1_ref[...]
    h = jnp.maximum(h, 0.0)
    # Folded conv2 -> fc1 -> [fc_mu | fc_logvar]: two GEMMs, one bias, one store.
    out = (jnp.dot(h.astype(wx_ref.dtype), wx_ref[...], preferred_element_type=f32)
           + jnp.dot(y_ref[...], wy_ref[...], preferred_element_type=f32)
           + b_ref[...])
    out_ref[...] = out.astype(out_ref.dtype)


def encoder_forward(prep, x, y):
    """x: (B, Cin, H, W) NCHW, y: (B, embedding_dim).  Returns (mu, logvar) in f32."""
    B, Cin, H, W = x.shape
    dtype = prep["w1"].dtype
    x2d = x.reshape(B, Cin * H * W).astype(dtype)   # free view (w1 rows are NCHW-ordered)
    yv = y.astype(dtype)

    w1, b1 = prep["w1"], prep["b1"]
    wx, wy, b = prep["wx"], prep["wy"], prep["b"]
    K1, N1 = w1.shape
    emb = wy.shape[0]
    two_lat = wx.shape[1]

    # Batch tiling: whole batch in one program at small B; at large B use >= 2
    # sublane-aligned "parallel" programs (v7x megacore), capped at 1024 rows
    # (per-tile VMEM footprint stays far below the v7x 32 MiB scoped limit).
    if B <= 256:
        bm = B
    else:
        bm = min(_round_up(pl.cdiv(B, 2), 8), 1024)
    grid = (pl.cdiv(B, bm),)

    def batch_spec(ncols):
        return pl.BlockSpec((bm, ncols), lambda i: (i, 0))

    def full_spec(a):
        r, c = a.shape
        return pl.BlockSpec((r, c), lambda i: (0, 0))

    itemsize = jnp.dtype(dtype).itemsize
    flops = 2 * B * (K1 * N1 + N1 * two_lat + emb * two_lat)
    bytes_accessed = (B * (K1 + emb) * itemsize
                      + sum(a.size * a.dtype.itemsize for a in (w1, b1, wx, wy, b))
                      + B * two_lat * 4)

    out = pl.pallas_call(
        _encoder_fused_kernel,
        out_shape=jax.ShapeDtypeStruct((B, two_lat), jnp.float32),
        grid=grid,
        in_specs=[batch_spec(K1), batch_spec(emb),
                  full_spec(w1), full_spec(b1),
                  full_spec(wx), full_spec(wy), full_spec(b)],
        out_specs=batch_spec(two_lat),
        compiler_params=pltpu.CompilerParams(dimension_semantics=("parallel",)),
        cost_estimate=pl.CostEstimate(flops=flops, transcendentals=0,
                                      bytes_accessed=bytes_accessed),
    )(x2d, yv, w1, b1, wx, wy, b)

    lat = two_lat // 2
    return out[:, :lat], out[:, lat:]


# ----------------------------------------------------------------------------
# Pure-JAX reference (correctness check only)
# ----------------------------------------------------------------------------
def encoder_forward_ref(params, x, y):
    def conv(v, w, b):
        out = lax.conv_general_dilated(
            v, w, window_strides=(2, 2), padding=[(1, 1), (1, 1)],
            dimension_numbers=("NCHW", "OIHW", "NCHW"))
        return out + b.reshape(1, -1, 1, 1)

    h = jnp.maximum(conv(x, params["conv1_w"], params["conv1_b"]), 0.0)
    h = conv(h, params["conv2_w"], params["conv2_b"])
    h = h.reshape(h.shape[0], -1)
    e = h @ params["fc1_w"].T + params["fc1_b"]
    cat = jnp.concatenate([e, y], axis=-1)
    mu = cat @ params["fc_mu_w"].T + params["fc_mu_b"]
    lv = cat @ params["fc_lv_w"].T + params["fc_lv_b"]
    return mu, lv


# ----------------------------------------------------------------------------
if __name__ == "__main__":
    # Shapes implied by the module: fc1.in_features == hidden_dim -> 4x4 input.
    B, in_dim, hidden_dim, latent_dim, embedding_dim = 2, 3, 32, 8, 16
    H = W = 4
    k = 4

    key = jax.random.PRNGKey(0)
    ks = jax.random.split(key, 12)
    params = {
        "conv1_w": 0.1 * jax.random.normal(ks[0], (hidden_dim, in_dim, k, k), jnp.float32),
        "conv1_b": 0.1 * jax.random.normal(ks[1], (hidden_dim,), jnp.float32),
        "conv2_w": 0.1 * jax.random.normal(ks[2], (hidden_dim, hidden_dim, k, k), jnp.float32),
        "conv2_b": 0.1 * jax.random.normal(ks[3], (hidden_dim,), jnp.float32),
        "fc1_w": 0.1 * jax.random.normal(ks[4], (embedding_dim, hidden_dim), jnp.float32),
        "fc1_b": 0.1 * jax.random.normal(ks[5], (embedding_dim,), jnp.float32),
        "fc_mu_w": 0.1 * jax.random.normal(ks[6], (latent_dim, 2 * embedding_dim), jnp.float32),
        "fc_mu_b": 0.1 * jax.random.normal(ks[7], (latent_dim,), jnp.float32),
        "fc_lv_w": 0.1 * jax.random.normal(ks[8], (latent_dim, 2 * embedding_dim), jnp.float32),
        "fc_lv_b": 0.1 * jax.random.normal(ks[9], (latent_dim,), jnp.float32),
    }
    x = jax.random.normal(ks[10], (B, in_dim, H, W), jnp.float32)
    y = jax.random.normal(ks[11], (B, embedding_dim), jnp.float32)

    mu_ref, lv_ref = encoder_forward_ref(params, x, y)

    # --- f32 path: strict check against the layer-by-layer reference ----------
    prep_f32 = prepare_params(params, H, W, dtype=jnp.float32)   # one-time lowering
    mu, logvar = jax.jit(encoder_forward)(prep_f32, x, y)
    mu = jax.block_until_ready(mu)
    logvar = jax.block_until_ready(logvar)
    assert mu.shape == (B, latent_dim) and logvar.shape == (B, latent_dim)
    assert jnp.allclose(mu, mu_ref, atol=1e-5, rtol=1e-5), float(jnp.max(jnp.abs(mu - mu_ref)))
    assert jnp.allclose(logvar, lv_ref, atol=1e-5, rtol=1e-5), float(jnp.max(jnp.abs(logvar - lv_ref)))

    # --- bf16 GEMM-operand path (memory-bound large-B optimization) -----------
    prep_bf16 = prepare_params(params, H, W, dtype=jnp.bfloat16)
    mu_b, lv_b = jax.jit(encoder_forward)(prep_bf16, x, y)
    mu_b = jax.block_until_ready(mu_b)
    lv_b = jax.block_until_ready(lv_b)
    assert jnp.allclose(mu_b, mu_ref, atol=5e-2, rtol=5e-2), float(jnp.max(jnp.abs(mu_b - mu_ref)))
    assert jnp.allclose(lv_b, lv_ref, atol=5e-2, rtol=5e-2), float(jnp.max(jnp.abs(lv_b - lv_ref)))

    print("KERNEL_OK")
</pallas_src>

<mosaic_0001>
module attributes {stable_mosaic.version = 11 : i64} {
  func.func @_encoder_fused_kernel(%arg0: i32, %arg1: memref<2x48xf32, #tpu.memory_space<vmem>>, %arg2: memref<2x16xf32, #tpu.memory_space<vmem>>, %arg3: memref<48x128xf32, #tpu.memory_space<vmem>>, %arg4: memref<1x128xf32, #tpu.memory_space<vmem>>, %arg5: memref<128x16xf32, #tpu.memory_space<vmem>>, %arg6: memref<16x16xf32, #tpu.memory_space<vmem>>, %arg7: memref<1x16xf32, #tpu.memory_space<vmem>>, %arg8: memref<2x16xf32, #tpu.memory_space<vmem>>) attributes {dimension_semantics = [#tpu.dimension_semantics<parallel>], iteration_bounds = array<i64: 1>, scalar_prefetch = 0 : i64, scratch_operands = 0 : i64, tpu.core_type = #tpu.core_type<tc>, window_params = [{transform_indices = @transform_0, window_bounds = array<i64: 2, 48>}, {transform_indices = @transform_1, window_bounds = array<i64: 2, 16>}, {pipeline_mode = #tpu.pipeline_mode<synchronous>, transform_indices = @transform_2, window_bounds = array<i64: 48, 128>}, {pipeline_mode = #tpu.pipeline_mode<synchronous>, transform_indices = @transform_3, window_bounds = array<i64: 1, 128>}, {pipeline_mode = #tpu.pipeline_mode<synchronous>, transform_indices = @transform_4, window_bounds = array<i64: 128, 16>}, {pipeline_mode = #tpu.pipeline_mode<synchronous>, transform_indices = @transform_5, window_bounds = array<i64: 16, 16>}, {pipeline_mode = #tpu.pipeline_mode<synchronous>, transform_indices = @transform_6, window_bounds = array<i64: 1, 16>}, {transform_indices = @transform_7, window_bounds = array<i64: 2, 16>}]} {
    %c0 = arith.constant 0 : index
    %c0_0 = arith.constant 0 : index
    %0 = vector.load %arg1[%c0, %c0_0] : memref<2x48xf32, #tpu.memory_space<vmem>>, vector<2x48xf32>
    %c0_1 = arith.constant 0 : index
    %c0_2 = arith.constant 0 : index
    %1 = vector.load %arg3[%c0_1, %c0_2] : memref<48x128xf32, #tpu.memory_space<vmem>>, vector<48x128xf32>
    %cst = arith.constant dense<0.000000e+00> : vector<2x128xf32>
    %2 = tpu.matmul %0, %1, %cst {dimension_numbers = #tpu.dot_dimension_numbers<[1], [0], [0], [1], [0, 0, 1, 1], [], []>} : vector<2x48xf32>, vector<48x128xf32>, vector<2x128xf32> -> vector<2x128xf32>
    %c0_3 = arith.constant 0 : index
    %c0_4 = arith.constant 0 : index
    %3 = vector.load %arg4[%c0_3, %c0_4] : memref<1x128xf32, #tpu.memory_space<vmem>>, vector<1x128xf32>
    %4 = vector.broadcast %3 : vector<1x128xf32> to vector<2x128xf32>
    %5 = arith.addf %2, %4 : vector<2x128xf32>
    %cst_5 = arith.constant 0.000000e+00 : f32
    %6 = vector.broadcast %cst_5 : f32 to vector<2x128xf32>
    %7 = arith.maximumf %5, %6 : vector<2x128xf32>
    %c0_6 = arith.constant 0 : index
    %c0_7 = arith.constant 0 : index
    %8 = vector.load %arg5[%c0_6, %c0_7] : memref<128x16xf32, #tpu.memory_space<vmem>>, vector<128x16xf32>
    %cst_8 = arith.constant dense<0.000000e+00> : vector<2x16xf32>
    %9 = tpu.matmul %7, %8, %cst_8 {dimension_numbers = #tpu.dot_dimension_numbers<[1], [0], [0], [1], [0, 0, 1, 1], [], []>} : vector<2x128xf32>, vector<128x16xf32>, vector<2x16xf32> -> vector<2x16xf32>
    %c0_9 = arith.constant 0 : index
    %c0_10 = arith.constant 0 : index
    %10 = vector.load %arg2[%c0_9, %c0_10] : memref<2x16xf32, #tpu.memory_space<vmem>>, vector<2x16xf32>
    %c0_11 = arith.constant 0 : index
    %c0_12 = arith.constant 0 : index
    %11 = vector.load %arg6[%c0_11, %c0_12] : memref<16x16xf32, #tpu.memory_space<vmem>>, vector<16x16xf32>
    %cst_13 = arith.constant dense<0.000000e+00> : vector<2x16xf32>
    %12 = tpu.matmul %10, %11, %cst_13 {dimension_numbers = #tpu.dot_dimension_numbers<[1], [0], [0], [1], [0, 0, 1, 1], [], []>} : vector<2x16xf32>, vector<16x16xf32>, vector<2x16xf32> -> vector<2x16xf32>
    %13 = arith.addf %9, %12 : vector<2x16xf32>
    %c0_14 = arith.constant 0 : index
    %c0_15 = arith.constant 0 : index
    %14 = vector.load %arg7[%c0_14, %c0_15] : memref<1x16xf32, #tpu.memory_space<vmem>>, vector<1x16xf32>
    %15 = vector.broadcast %14 : vector<1x16xf32> to vector<2x16xf32>
    %16 = arith.addf %13, %15 : vector<2x16xf32>
    %c0_16 = arith.constant 0 : index
    %c0_17 = arith.constant 0 : index
    %17 = vector.load %arg8[%c0_16, %c0_17] : memref<2x16xf32, #tpu.memory_space<vmem>>, vector<2x16xf32>
    tpu.vector_store %arg8[%c0_16, %c0_17], %16 {strides = array<i32>} : memref<2x16xf32, #tpu.memory_space<vmem>>, vector<2x16xf32>,
    return
  }
  func.func @transform_0(%arg0: i32) -> (i32, i32) {
    %c0_i32 = arith.constant 0 : i32
    %c0_i32_0 = arith.constant 0 : i32
    return %arg0, %c0_i32 : i32, i32
  }
  func.func @transform_1(%arg0: i32) -> (i32, i32) {
    %c0_i32 = arith.constant 0 : i32
    %c0_i32_0 = arith.constant 0 : i32
    return %arg0, %c0_i32 : i32, i32
  }
  func.func @transform_2(%arg0: i32) -> (i32, i32) {
    %c0_i32 = arith.constant 0 : i32
    %c0_i32_0 = arith.constant 0 : i32
    %c0_i32_1 = arith.constant 0 : i32
    return %c0_i32, %c0_i32_0 : i32, i32
  }
  func.func @transform_3(%arg0: i32) -> (i32, i32) {
    %c0_i32 = arith.constant 0 : i32
    %c0_i32_0 = arith.constant 0 : i32
    %c0_i32_1 = arith.constant 0 : i32
    return %c0_i32, %c0_i32_0 : i32, i32
  }
  func.func @transform_4(%arg0: i32) -> (i32, i32) {
    %c0_i32 = arith.constant 0 : i32
    %c0_i32_0 = arith.constant 0 : i32
    %c0_i32_1 = arith.constant 0 : i32
    return %c0_i32, %c0_i32_0 : i32, i32
  }
  func.func @transform_5(%arg0: i32) -> (i32, i32) {
    %c0_i32 = arith.constant 0 : i32
    %c0_i32_0 = arith.constant 0 : i32
    %c0_i32_1 = arith.constant 0 : i32
    return %c0_i32, %c0_i32_0 : i32, i32
  }
  func.func @transform_6(%arg0: i32) -> (i32, i32) {
    %c0_i32 = arith.constant 0 : i32
    %c0_i32_0 = arith.constant 0 : i32
    %c0_i32_1 = arith.constant 0 : i32
    return %c0_i32, %c0_i32_0 : i32, i32
  }
  func.func @transform_7(%arg0: i32) -> (i32, i32) {
    %c0_i32 = arith.constant 0 : i32
    %c0_i32_0 = arith.constant 0 : i32
    return %arg0, %c0_i32 : i32, i32
  }
}

</mosaic_0001>

<bundles_post_ra>
// kernel: encoder_forward.1
= control target key start
LH: loop header
LB: loop body
LE: loop exit
PB: predicated region body
PF: predicated region fallthrough
CT: control target
= control target key end

     0   :  { %v419_v0 = vmov 0.0|0.0   ;;  %vm420_vm0 = vmmov 0   ;;  %v421_v4 = vmov 0.0   ;;  %vm40_vm1 = vcmask 392192   ;;  %s552_s2 = inlined_call_operand.vmem [shape: f32[48,128], index: 2, kind: input, shape index: {}]   ;;  %s553_s4 = inlined_call_operand.vmem [shape: f32[128,16], index: 4, kind: input, shape index: {}]   ;;  %s554_s0 = inlined_call_operand.vmem [shape: f32[2,48], index: 0, kind: input, shape index: {}]   ;;  %s555_s5 = inlined_call_operand.vmem [shape: f32[16,16], index: 5, kind: input, shape index: {}]   ;;  %s556_s1 = inlined_call_operand.vmem [shape: f32[2,16], index: 1, kind: input, shape index: {}]   ;;  %s557_s3 = inlined_call_operand.vmem [shape: f32[1,128], index: 3, kind: input, shape index: {}]   ;;  %s558_s6 = inlined_call_operand.vmem [shape: f32[1,16], index: 6, kind: input, shape index: {}]   ;;  %s559_s7 = inlined_call_operand.vmem [shape: f32[2,16], index: 7, kind: output, shape index: {}]  }
   0x1   :  { %380 = vmatprep.subr.bf16.mxu0 %v419_v0  ;;  %v27_v1 = vld [vmem:[%s552_s2] sm:$0xff]  ;;  %v28_v2 = vld [vmem:[%s552_s2 + $0x8] sm:$0xff]  ;;  %v29_v3 = vld [vmem:[%s552_s2 + $0x10] sm:$0xff]  ;;  %335 = vmatprep.mubr.msk.f32.mxu0 %vm420_vm0, %v421_v4  ;;  %vm134_vm2 = vcmask 130048   ;;  %vm286_vm3 = vcmask 123904  }
   0x2   :  { %v381_v5 = vpack.c.bf16 %v28_v2, %v27_v1  ;;  %v30_v6 = vld [vmem:[%s552_s2 + $0x18] sm:$0xff]  ;;  %392 = vmatprep.subr.bf16.mxu1 %v419_v0  ;;  %377 = vmatprep.mubr.msk.f32.mxu1 %vm420_vm0, %v421_v4  ;;  %v115_v7 = vld [vmem:[%s553_s4] sm:$0xff]  ;;  %v116_v8 = vld [vmem:[%s553_s4 + $0x8] sm:$0xff] }
   0x3   :  { %v384_v9 = vpack.c.bf16 %v30_v6, %v29_v3  ;;  %v393_v10 = vpack.c.bf16 %v116_v8, %v115_v7  ;;  %v117_v11 = vld [vmem:[%s553_s4 + $0x10] sm:$0xff]  ;;  %v118_v12 = vld [vmem:[%s553_s4 + $0x18] sm:$0xff]  ;;  %v31_v13 = vld [vmem:[%s552_s2 + $0x20] sm:$0xff] }
   0x4   :  { %382 = vmatpush3.bf16.msra.mxu0 %v381_v5  ;;  %v32_v14 = vld [vmem:[%s552_s2 + $0x28] sm:$0xff]  ;;  %v396_v15 = vpack.c.bf16 %v118_v12, %v117_v11  ;;  %v119_v16 = vld [vmem:[%s553_s4 + $0x20] sm:$0xff]  ;;  %v121_v20 = vld [vmem:[%s553_s4 + $0x30] sm:$0xff] }
   0x5   :  { %383 = vmatprep.subr.bf16.mxu0 %v419_v0  ;;  %394 = vmatpush3.bf16.msra.mxu1 %v393_v10  ;;  %v120_v17 = vld [vmem:[%s553_s4 + $0x28] sm:$0xff]  ;;  %v387_v18 = vpack.c.bf16 %v32_v14, %v31_v13  ;;  %v122_v21 = vld [vmem:[%s553_s4 + $0x38] sm:$0xff]  ;;  %v26_v22 = vld [vmem:[%s554_s0] sm:$0x3] }
   0x6   :  { %395 = vmatprep.subr.bf16.mxu1 %v419_v0  ;;  %v399_v19 = vpack.c.bf16 %v120_v17, %v119_v16  ;;  %v402_v23 = vpack.c.bf16 %v122_v21, %v121_v20  ;;  %v123_v24 = vld [vmem:[%s553_s4 + $0x40] sm:$0xff]  ;;  %v124_v25 = vld [vmem:[%s553_s4 + $0x48] sm:$0xff]  ;;  %v125_v27 = vld [vmem:[%s553_s4 + $0x50] sm:$0xff] }
   0x7   :  { %v405_v26 = vpack.c.bf16 %v124_v25, %v123_v24  ;;  %v126_v28 = vld [vmem:[%s553_s4 + $0x58] sm:$0xff]  ;;  %v127_v30 = vld [vmem:[%s553_s4 + $0x60] sm:$0xff]  ;;  %v128_v31 = vld [vmem:[%s553_s4 + $0x68] sm:$0xff] }
   0x8   :  { %385 = vmatpush3.bf16.msra.mxu0 %v384_v9  ;;  %v408_v29 = vpack.c.bf16 %v126_v28, %v125_v27  ;;  %v411_v32 = vpack.c.bf16 %v128_v31, %v127_v30  ;;  %v132_v33 = vld [vmem:[%s555_s5] sm:$0xff]  ;;  %v133_v34 = vld [vmem:[%s555_s5 + $0x8] sm:$0xff]  ;;  %v129_v36 = vld [vmem:[%s553_s4 + $0x70] sm:$0xff] }
   0x9   :  { %386 = vmatprep.subr.bf16.mxu0 %v419_v0  ;;  %397 = vmatpush3.bf16.msra.mxu1 %v396_v15  ;;  %v390_v35 = vpack.c.bf16 %v133_v34, %v132_v33  ;;  %v130_v37 = vld [vmem:[%s553_s4 + $0x78] sm:$0xff]  ;;  %v131_v39 = vld [vmem:[%s556_s1] sm:$0x3] }
   0xa   :  { %398 = vmatprep.subr.bf16.mxu1 %v419_v0  ;;  %v414_v38 = vpack.c.bf16 %v130_v37, %v129_v36  ;;  %v292_v40 = vld [vmem:[%s557_s3] ss:$0 sm:$0xff] }
   0xb   :  { %v295_v48 = vld [vmem:[%s558_s6] ss:$0 sm:$0xff] }
   0xc   :  { %388 = vmatpush3.bf16.msra.mxu0 %v387_v18 }
   0xd   :  { %389 = vmatprep.subr.bf16.mxu0 %v419_v0  ;;  %400 = vmatpush3.bf16.msra.mxu1 %v399_v19 }
   0xe   :  { %401 = vmatprep.subr.bf16.mxu1 %v419_v0 }
   0xf   :  { %336 = vmatmul.mubr.msk.f32.vlgmr.msra.gmra.mrb[0].mxu0 %vm40_vm1, %v26_v22 }
  0x10   :  { %342 = vmatprep.mubr.msk.f32.mxu0 %vm420_vm0, %v421_v4  ;;  %391 = vmatpush3.bf16.msra.mxu0 %v390_v35 }
  0x11   :  { %403 = vmatpush3.bf16.msra.mxu1 %v402_v23 }
  0x12   :  { %404 = vmatprep.subr.bf16.mxu1 %v419_v0 }
  0x13   :  { %343 = vmatmul.mubr.msk.f32.vlgmr.msra.gmra.mrb[2].mxu0 %vm134_vm2, %v131_v39 }
  0x15   :  { %406 = vmatpush3.bf16.msra.mxu1 %v405_v26 }
  0x16   :  { %407 = vmatprep.subr.bf16.mxu1 %v419_v0 }
  0x19   :  { %409 = vmatpush3.bf16.msra.mxu1 %v408_v29 }
  0x1a   :  { %410 = vmatprep.subr.bf16.mxu1 %v419_v0 }
  0x1d   :  { %412 = vmatpush3.bf16.msra.mxu1 %v411_v32 }
  0x1e   :  { %413 = vmatprep.subr.bf16.mxu1 %v419_v0 }
  0x21   :  { %415 = vmatpush3.bf16.msra.mxu1 %v414_v38 }
  0xe2   :  { %v110_v41 = vpop.f32.mrb[0].mxu0 }
  0xe3   :  { %v111_v42 = vadd.f32 %v292_v40, %v110_v41  ;;  %v337_v43 = vpop.f32.mrb[1].mxu0 }
  0xe5   :  { %v114_v44 = vmax.f32 %v111_v42, 0.0 }
  0xe6   :  { %v204_v45 = vpop.f32.mrb[2].mxu0 }
  0xe7   :  { %378 = vmatmul.mubr.f32.vlgmr.msra.gmra.mrb[0].mxu1 %v114_v44  ;;  %v344_v46 = vpop.f32.mrb[3].mxu0 }
 0x1ba   :  { %v274_v47 = vpop.f32.mrb[0].mxu1 }
 0x1bb   :  { %v275_v49 = vadd.f32 %v274_v47, %v204_v45  ;;  %v379_v50 = vpop.f32.mrb[1].mxu1 }
 0x1bd   :  { %v285_v51 = vadd.f32 %v295_v48, %v275_v49 }
 0x1bf   :  { %287 = vst.msk [vmem:[%s559_s7] sm:$0x3] %vm286_vm3, %v285_v51 }

</bundles_post_ra>
